<compile_context>
chip_gen: v6e
topology: v6e:2x2x1
jax: 0.10.0
libtpu: 0.0.40
codegen_flags: <defaults>
</compile_context>

<pallas_src>
import functools

import jax
import jax.numpy as jnp
from jax import lax
from jax.experimental import pallas as pl
from jax.experimental.pallas import tpu as pltpu

_LANES = 128
_ONE_LANE = _LANES - 1          # constant-1 lane used to fold biases into matmuls
# Row offsets inside the packed parameter slab (all 8-row aligned).
_W1_OFF = 0 * _LANES            # rows [  0,128): W1, filled [in_features, hidden]
_W2_OFF = 1 * _LANES            # rows [128,256): W2 (+ b2 folded into row _ONE_LANE)
_WH_OFF = 2 * _LANES            # rows [256,384): fused heads (+ biases in row _ONE_LANE)
_B_OFF = 3 * _LANES             # rows [384,392): row0=b1(+const seed), row3=mask, row4=value sel
_SLAB_ROWS = 3 * _LANES + 8     # 392
_NEG = -1e30                    # softmax mask value (underflows to 0 after exp)


def _a2c_kernel(x_ref, p_ref, o_ref, *, in_features, out_lanes):
    hp = lax.Precision.HIGHEST
    x = x_ref[...]                                              # (tb, in_features)

    w1 = p_ref[_W1_OFF:_W1_OFF + in_features, :]                # (in_features, 128)
    w2 = p_ref[_W2_OFF:_W2_OFF + _LANES, :]                     # (128, 128), b2 folded in
    wh = p_ref[_WH_OFF:_WH_OFF + _LANES, :]                     # fused heads, biases folded in
    misc = p_ref[_B_OFF:_B_OFF + 8, :]                          # (8, 128)
    b1 = misc[0:1, :]                                           # lane _ONE_LANE == 1 -> const lane
    mask_row = misc[3:4, :]                                     # 0 on action lanes, -1e30 elsewhere
    sel_row = misc[4:5, :]                                      # 1 on value lane, else 0

    # Backbone: Linear -> ReLU -> Linear -> ReLU.
    # b1 carries a 1.0 in lane _ONE_LANE so h1/common keep a constant-1 lane that the
    # folded bias rows of w2/wh multiply against (exact math, one fewer VPU add each).
    h1 = jnp.maximum(
        jnp.dot(x, w1, preferred_element_type=jnp.float32, precision=hp) + b1, 0.0)
    common = jnp.maximum(
        jnp.dot(h1, w2, preferred_element_type=jnp.float32, precision=hp), 0.0)

    # Fused policy+value head: lanes [0:A] = logits, lane A = value (biases folded).
    head = jnp.dot(common, wh, preferred_element_type=jnp.float32, precision=hp)

    logits = head + mask_row                                    # non-action lanes -> -1e30
    m = jnp.max(logits, axis=-1, keepdims=True)
    e = jnp.exp(logits - m)                                     # masked lanes -> 0
    probs = e / jnp.sum(e, axis=-1, keepdims=True)              # exact divide (sampler-safe)

    # [softmax probs | value | zeros] in the first out_lanes lanes.
    o_ref[...] = (probs + head * sel_row)[:, :out_lanes]


def pack_params(params, in_features, hidden, num_actions):
    """Pack (w1,b1,w2,b2,wp,bp,wv,bv) into one zero-padded (392,128) f32 slab."""
    assert in_features <= _LANES and hidden <= _ONE_LANE and num_actions + 1 <= _ONE_LANE
    w1, b1, w2, b2, wp, bp, wv, bv = params
    slab = jnp.zeros((_SLAB_ROWS, _LANES), jnp.float32)

    # Layer 1 weights (column _ONE_LANE stays 0 so the constant lane is exactly b1's 1.0).
    slab = slab.at[_W1_OFF:_W1_OFF + in_features, 0:hidden].set(w1)

    # Layer 2 weights with b2 folded into the constant-lane row; pass the constant lane through.
    slab = slab.at[_W2_OFF:_W2_OFF + hidden, 0:hidden].set(w2)
    slab = slab.at[_W2_OFF + _ONE_LANE, 0:hidden].set(b2.reshape(-1))
    slab = slab.at[_W2_OFF + _ONE_LANE, _ONE_LANE].set(1.0)

    # Fused policy+value head with both biases folded into the constant-lane row.
    slab = slab.at[_WH_OFF:_WH_OFF + hidden, 0:num_actions].set(wp)
    slab = slab.at[_WH_OFF:_WH_OFF + hidden, num_actions:num_actions + 1].set(wv)
    slab = slab.at[_WH_OFF + _ONE_LANE, 0:num_actions].set(bp.reshape(-1))
    slab = slab.at[_WH_OFF + _ONE_LANE, num_actions].set(bv.reshape(-1)[0])

    # Misc block: b1 (+ constant-1 seed), softmax mask row, value-selector row.
    slab = slab.at[_B_OFF + 0, 0:hidden].set(b1.reshape(-1))
    slab = slab.at[_B_OFF + 0, _ONE_LANE].set(1.0)
    lane = jnp.arange(_LANES)
    slab = slab.at[_B_OFF + 3, :].set(jnp.where(lane < num_actions, 0.0, _NEG).astype(jnp.float32))
    slab = slab.at[_B_OFF + 4, :].set((lane == num_actions).astype(jnp.float32))
    return slab


def _round_up(v, m):
    return -(-v // m) * m


def _num_tensorcores():
    """Best-effort TensorCore count per chip (2 on v7x, 1 on v5e/v6e)."""
    try:
        d = jax.devices()[0]
        return max(1, int(getattr(d, "num_cores", 1) or 1))
    except Exception:
        return 1


@functools.partial(
    jax.jit,
    static_argnames=("in_features", "num_actions", "block_b", "grid_steps"))
def _a2c_forward_jit(state, packed_params, *, in_features, num_actions, block_b, grid_steps):
    x = jnp.asarray(state, jnp.float32)
    if x.ndim == 1:
        x = x.reshape(1, -1)                                    # PyTorch unsqueeze(0)
    b = x.shape[0]

    # Batch tile: one big tile per TensorCore (the grid is a sequential loop per core),
    # capped at block_b rows.  grid_steps > 1 only when the chip has multiple TCs.
    if grid_steps > 1 and b >= grid_steps * 8:
        tb = _round_up(-(-b // grid_steps), 8)
    else:
        tb = _round_up(max(b, 8), 8)
    tb = min(tb, block_b)
    b_pad = _round_up(max(b, 8), tb)

    x_pad = x if b_pad == b else jnp.pad(x, ((0, b_pad - b), (0, 0)))  # fuses under jit

    out_lanes = _round_up(num_actions + 1, 8)
    grid = (b_pad // tb,)

    out = pl.pallas_call(
        functools.partial(_a2c_kernel, in_features=in_features, out_lanes=out_lanes),
        out_shape=jax.ShapeDtypeStruct((b_pad, out_lanes), jnp.float32),
        grid_spec=pltpu.PrefetchScalarGridSpec(
            num_scalar_prefetch=0,
            grid=grid,
            in_specs=[
                # last dim == full array dim -> legal block shape with only 8 lanes
                pl.BlockSpec((tb, in_features), lambda i: (i, 0)),
                pl.BlockSpec((_SLAB_ROWS, _LANES), lambda i: (0, 0)),   # weights resident
            ],
            out_specs=pl.BlockSpec((tb, out_lanes), lambda i: (i, 0)),
        ),
        compiler_params=pltpu.CompilerParams(
            dimension_semantics=("parallel",)),                 # shards steps across TCs on v7x
    )(x_pad, packed_params)

    policy = out[:b, :num_actions]                              # fused slices under jit
    value = out[:b, num_actions:num_actions + 1]
    return policy, value


def a2c_forward(state, packed_params, *, in_features, num_actions, block_b=1024):
    """state: (in_features,) or (B, in_features).  Returns (policy (B,A), value (B,1))."""
    return _a2c_forward_jit(state, packed_params, in_features=in_features,
                            num_actions=num_actions, block_b=block_b,
                            grid_steps=_num_tensorcores())


def init_params(key, in_features=8, out_features=16, num_actions=4):
    """PyTorch-Linear-style init (U[-1/sqrt(fan_in), 1/sqrt(fan_in)]).
    Weights stored as (fan_in, fan_out); biases as (1, fan_out)."""
    def linear(k, fan_in, fan_out):
        kw, kb = jax.random.split(k)
        bound = 1.0 / jnp.sqrt(fan_in)
        w = jax.random.uniform(kw, (fan_in, fan_out), jnp.float32, -bound, bound)
        b = jax.random.uniform(kb, (1, fan_out), jnp.float32, -bound, bound)
        return w, b

    k1, k2, k3, k4 = jax.random.split(key, 4)
    w1, b1 = linear(k1, in_features, out_features)   # backbone[0]
    w2, b2 = linear(k2, out_features, out_features)  # backbone[2]
    wp, bp = linear(k3, out_features, num_actions)   # policy_head
    wv, bv = linear(k4, out_features, 1)             # value_head
    return (w1, b1, w2, b2, wp, bp, wv, bv)


def _ref_forward(x2d, params):
    hp = lax.Precision.HIGHEST
    w1, b1, w2, b2, wp, bp, wv, bv = params
    h1 = jnp.maximum(jnp.dot(x2d, w1, precision=hp) + b1, 0.0)
    common = jnp.maximum(jnp.dot(h1, w2, precision=hp) + b2, 0.0)
    policy = jax.nn.softmax(jnp.dot(common, wp, precision=hp) + bp, axis=-1)
    value = jnp.dot(common, wv, precision=hp) + bv
    return policy, value


if __name__ == "__main__":
    in_features, hidden, num_actions = 8, 16, 4
    key = jax.random.PRNGKey(0)
    pkey, skey = jax.random.split(key)

    params = init_params(pkey, in_features, hidden, num_actions)
    packed = pack_params(params, in_features, hidden, num_actions)

    # --- single-state path (matches PyTorch forward: unsqueeze(0)) ---
    state = jax.random.normal(skey, (in_features,), jnp.float32)
    policy, value = a2c_forward(state, packed,
                                in_features=in_features, num_actions=num_actions)
    jax.block_until_ready((policy, value))
    assert policy.shape == (1, num_actions)
    assert value.shape == (1, 1)
    assert jnp.allclose(jnp.sum(policy), 1.0, atol=1e-5)

    p_ref, v_ref = _ref_forward(state.reshape(1, -1), params)
    assert jnp.allclose(policy, p_ref, atol=1e-5, rtol=1e-4)
    assert jnp.allclose(value, v_ref, atol=1e-5, rtol=1e-4)

    # --- batched path (perf mode: many environment states per call) ---
    batch = 64
    states = jax.random.normal(jax.random.PRNGKey(1), (batch, in_features), jnp.float32)
    pol_b, val_b = a2c_forward(states, packed,
                               in_features=in_features, num_actions=num_actions)
    jax.block_until_ready((pol_b, val_b))
    assert pol_b.shape == (batch, num_actions)
    assert val_b.shape == (batch, 1)
    pb_ref, vb_ref = _ref_forward(states, params)
    assert jnp.allclose(pol_b, pb_ref, atol=1e-5, rtol=1e-4)
    assert jnp.allclose(val_b, vb_ref, atol=1e-5, rtol=1e-4)

    print("KERNEL_OK")
</pallas_src>

<mosaic_0001>
module attributes {stable_mosaic.version = 11 : i64} {
  func.func @_a2c_kernel(%arg0: i32, %arg1: memref<8x8xf32, #tpu.memory_space<vmem>>, %arg2: memref<392x128xf32, #tpu.memory_space<vmem>>, %arg3: memref<8x8xf32, #tpu.memory_space<vmem>>) attributes {dimension_semantics = [#tpu.dimension_semantics<parallel>], iteration_bounds = array<i64: 1>, scalar_prefetch = 0 : i64, scratch_operands = 0 : i64, tpu.core_type = #tpu.core_type<tc>, window_params = [{transform_indices = @transform_0, window_bounds = array<i64: 8, 8>}, {pipeline_mode = #tpu.pipeline_mode<synchronous>, transform_indices = @transform_1, window_bounds = array<i64: 392, 128>}, {transform_indices = @transform_2, window_bounds = array<i64: 8, 8>}]} {
    %c0 = arith.constant 0 : index
    %c0_0 = arith.constant 0 : index
    %0 = vector.load %arg1[%c0, %c0_0] : memref<8x8xf32, #tpu.memory_space<vmem>>, vector<8x8xf32>
    %c0_1 = arith.constant 0 : index
    %c0_2 = arith.constant 0 : index
    %1 = vector.load %arg2[%c0_1, %c0_2] : memref<392x128xf32, #tpu.memory_space<vmem>>, vector<8x128xf32>
    %c128 = arith.constant 128 : index
    %c0_3 = arith.constant 0 : index
    %2 = vector.load %arg2[%c128, %c0_3] : memref<392x128xf32, #tpu.memory_space<vmem>>, vector<128x128xf32>
    %c256 = arith.constant 256 : index
    %c0_4 = arith.constant 0 : index
    %3 = vector.load %arg2[%c256, %c0_4] : memref<392x128xf32, #tpu.memory_space<vmem>>, vector<128x128xf32>
    %c384 = arith.constant 384 : index
    %c0_5 = arith.constant 0 : index
    %4 = vector.load %arg2[%c384, %c0_5] : memref<392x128xf32, #tpu.memory_space<vmem>>, vector<8x128xf32>
    %5 = vector.extract_strided_slice %4 {offsets = [0, 0], sizes = [1, 128], strides = [1, 1]} : vector<8x128xf32> to vector<1x128xf32>
    %6 = vector.extract_strided_slice %4 {offsets = [3, 0], sizes = [1, 128], strides = [1, 1]} : vector<8x128xf32> to vector<1x128xf32>
    %7 = vector.extract_strided_slice %4 {offsets = [4, 0], sizes = [1, 128], strides = [1, 1]} : vector<8x128xf32> to vector<1x128xf32>
    %cst = arith.constant dense<0.000000e+00> : vector<8x128xf32>
    %8 = tpu.matmul %0, %1, %cst {dimension_numbers = #tpu.dot_dimension_numbers<[1], [0], [0], [1], [0, 0, 1, 1], [], []>, precision = #tpu.contract_precision<fp32>} : vector<8x8xf32>, vector<8x128xf32>, vector<8x128xf32> -> vector<8x128xf32>
    %9 = vector.broadcast %5 : vector<1x128xf32> to vector<8x128xf32>
    %10 = arith.addf %8, %9 : vector<8x128xf32>
    %cst_6 = arith.constant 0.000000e+00 : f32
    %11 = vector.broadcast %cst_6 : f32 to vector<8x128xf32>
    %12 = arith.maximumf %10, %11 : vector<8x128xf32>
    %cst_7 = arith.constant dense<0.000000e+00> : vector<8x128xf32>
    %13 = tpu.matmul %12, %2, %cst_7 {dimension_numbers = #tpu.dot_dimension_numbers<[1], [0], [0], [1], [0, 0, 1, 1], [], []>, precision = #tpu.contract_precision<fp32>} : vector<8x128xf32>, vector<128x128xf32>, vector<8x128xf32> -> vector<8x128xf32>
    %cst_8 = arith.constant 0.000000e+00 : f32
    %14 = vector.broadcast %cst_8 : f32 to vector<8x128xf32>
    %15 = arith.maximumf %13, %14 : vector<8x128xf32>
    %cst_9 = arith.constant dense<0.000000e+00> : vector<8x128xf32>
    %16 = tpu.matmul %15, %3, %cst_9 {dimension_numbers = #tpu.dot_dimension_numbers<[1], [0], [0], [1], [0, 0, 1, 1], [], []>, precision = #tpu.contract_precision<fp32>} : vector<8x128xf32>, vector<128x128xf32>, vector<8x128xf32> -> vector<8x128xf32>
    %17 = vector.broadcast %6 : vector<1x128xf32> to vector<8x128xf32>
    %18 = arith.addf %16, %17 : vector<8x128xf32>
    %cst_10 = arith.constant dense<0xFF800000> : vector<8xf32>
    %19 = vector.multi_reduction <maximumf>, %18, %cst_10 [1] : vector<8x128xf32> to vector<8xf32>
    %20 = vector.shape_cast %19 : vector<8xf32> to vector<8x1xf32>
    %21 = vector.broadcast %20 : vector<8x1xf32> to vector<8x128xf32>
    %22 = arith.subf %18, %21 : vector<8x128xf32>
    %23 = math.exp %22 : vector<8x128xf32>
    %cst_11 = arith.constant dense<0.000000e+00> : vector<8xf32>
    %24 = vector.multi_reduction <add>, %23, %cst_11 [1] : vector<8x128xf32> to vector<8xf32>
    %25 = vector.shape_cast %24 : vector<8xf32> to vector<8x1xf32>
    %26 = vector.broadcast %25 : vector<8x1xf32> to vector<8x128xf32>
    %27 = arith.divf %23, %26 : vector<8x128xf32>
    %28 = vector.broadcast %7 : vector<1x128xf32> to vector<8x128xf32>
    %29 = arith.mulf %16, %28 : vector<8x128xf32>
    %30 = arith.addf %27, %29 : vector<8x128xf32>
    %31 = vector.extract_strided_slice %30 {offsets = [0, 0], sizes = [8, 8], strides = [1, 1]} : vector<8x128xf32> to vector<8x8xf32>
    %c0_12 = arith.constant 0 : index
    %c0_13 = arith.constant 0 : index
    %32 = vector.load %arg3[%c0_12, %c0_13] : memref<8x8xf32, #tpu.memory_space<vmem>>, vector<8x8xf32>
    tpu.vector_store %arg3[%c0_12, %c0_13], %31 {strides = array<i32>} : memref<8x8xf32, #tpu.memory_space<vmem>>, vector<8x8xf32>,
    return
  }
  func.func @transform_0(%arg0: i32) -> (i32, i32) {
    %c0_i32 = arith.constant 0 : i32
    %c0_i32_0 = arith.constant 0 : i32
    return %arg0, %c0_i32 : i32, i32
  }
  func.func @transform_1(%arg0: i32) -> (i32, i32) {
    %c0_i32 = arith.constant 0 : i32
    %c0_i32_0 = arith.constant 0 : i32
    %c0_i32_1 = arith.constant 0 : i32
    return %c0_i32, %c0_i32_0 : i32, i32
  }
  func.func @transform_2(%arg0: i32) -> (i32, i32) {
    %c0_i32 = arith.constant 0 : i32
    %c0_i32_0 = arith.constant 0 : i32
    return %arg0, %c0_i32 : i32, i32
  }
}

</mosaic_0001>

<bundles_post_ra>
// kernel: _a2c_forward_jit.1
= control target key start
LH: loop header
LB: loop body
LE: loop exit
PB: predicated region body
PF: predicated region fallthrough
CT: control target
= control target key end

     0   :  { %7 = vsyncpa [#allocation3], 0  ;;  %s2522_s9 = smov [#allocation2]   ;;  %s3298_s0 = inlined_call_operand.vmem [shape: f32[8,8], index: 0, kind: input, shape index: {}]   ;;  %s3299_s1 = inlined_call_operand.hbm [shape: f32[392,128], index: 1, kind: input, shape index: {}]   ;;  %s3300_s2 = inlined_call_operand.vmem [shape: f32[8,8], index: 2, kind: output, shape index: {}]  }
   0x1   :  { %s15_s10 = sshll.u32 %s2522_s9, 4  ;;  %s16_s10 = int_to_ptr.vmem [resolvable:$true] %s15_s10 }
   0x2   :  { %s2508_s11 = scalar_lea.vmem %s16_s10, 6272  ;;  %p2513_p1 = scmp.lt.s32.totalorder %s16_s10, %s16_s10 }
   0x3   :  { %p2509_p0 = scmp.ne.s32.totalorder %s16_s10, %s2508_s11  ;;  %p2514_p2 = scmp.lt.s32.totalorder %s2508_s11, %s2508_s11 }
   0x5   :  { %p2515_p3 = por %p2514_p2, %p2513_p1 }
   0x7   :  { %p2516_p4 = pnand %p2515_p3, %p2509_p0 }
   0x9   :  { %2519 = shalt.err (!%p2516_p4)
}
   0xa   :  { %s2523_s12 = smov 128   ;;  %s2524_s13 = smov 8  }
   0xb   :  { %21 = dma.hbm_to_vmem [thread:$0]  %s3299_s1, 6272, %s16_s10, [#allocation3], %s2523_s12, %s2523_s12, %s2524_s13  }
   0xc   :  { %2520 = dma.done.wait [#allocation3], 6272  }
   0xd   :  { %2521 = vsyncadd [#allocation3], 4294961024  ;;  %v2525_v0 = vmov 0.0   ;;  %vm2526_vm0 = vmmov 0   ;;  %vm64_vm1 = vcmask 64512   ;;  %v26_v1 = vld [vmem:[#allocation2] sm:$0xff] }
   0xe   :  { %2040 = vmatprep.subr.mxu0 %v2525_v0  ;;  %2045 = vmatprep.subr.mxu1 %v2525_v0  ;;  %v25_v2 = vld [vmem:[%s3298_s0] sm:$0xff]  ;;  %v42_v3 = vld [vmem:[#allocation2 + $0xf8] sm:$0xff]  ;;  %v99_v4 = vand.u32 4294901760, %v26_v1  ;;  %v41_v7 = vld [vmem:[#allocation2 + $0xf0] sm:$0xff] }
   0xf   :  { %2042 = vmatprep.mubr.msk.f32.mxu0 %vm2526_vm0, %v2525_v0  ;;  %2047 = vmatprep.mubr.msk.f32.mxu1 %vm2526_vm0, %v2525_v0  ;;  %v66_v5 = vsel %vm64_vm1, %v25_v2, 0  ;;  %v2555_v6 = vand.u32 4294901760, %v42_v3  ;;  %v40_v9 = vld [vmem:[#allocation2 + $0xe8] sm:$0xff]  ;;  %v2557_v11 = vand.u32 4294901760, %v41_v7  ;;  %v39_v13 = vld [vmem:[#allocation2 + $0xe0] sm:$0xff]  ;;  %v38_v18 = vld [vmem:[#allocation2 + $0xd8] sm:$0xff] }
  0x10   :  { %v134_v8 = vand.u32 4294901760, %v66_v5  ;;  %2041 = vmatpush3.msra.mxu0 %v99_v4  ;;  %v176_v10 = vsub.f32 %v26_v1, %v99_v4  ;;  %v2563_v16 = vand.u32 4294901760, %v40_v9  ;;  %v2568_v21 = vand.u32 4294901760, %v39_v13  ;;  %v37_v23 = vld [vmem:[#allocation2 + $0xd0] sm:$0xff]  ;;  %v36_v29 = vld [vmem:[#allocation2 + $0xc8] sm:$0xff]  ;;  %v35_v33 = vld [vmem:[#allocation2 + $0xc0] sm:$0xff] }
  0x11   :  { %2050 = vmatprep.subr.mxu0 %v2525_v0  ;;  %v2561_v15 = vsub.f32 %v42_v3, %v2555_v6  ;;  %v2566_v20 = vsub.f32 %v41_v7, %v2557_v11  ;;  %v2574_v27 = vand.u32 4294901760, %v38_v18  ;;  %v2580_v32 = vand.u32 4294901760, %v37_v23  ;;  %v34_v62 = vld [vmem:[#allocation2 + $0xb8] sm:$0xff]  ;;  %v33_v1 = vld [vmem:[#allocation2 + $0xb0] sm:$0xff] }
  0x12   :  { %v135_v12 = vsub.f32 %v66_v5, %v134_v8  ;;  %v177_v14 = vand.u32 4294901760, %v176_v10  ;;  %v2572_v26 = vsub.f32 %v40_v9, %v2563_v16  ;;  %v2578_v31 = vsub.f32 %v39_v13, %v2568_v21  ;;  %v31_v9 = vld [vmem:[#allocation2 + $0xa0] sm:$0xff] }
  0x13   :  { %v609_v25 = vand.u32 4294901760, %v2561_v15  ;;  %v616_v30 = vand.u32 4294901760, %v2566_v20  ;;  %v2588_v36 = vsub.f32 %v38_v18, %v2574_v27  ;;  %v2590_v37 = vand.u32 4294901760, %v36_v29 }
  0x14   :  { %v136_v17 = vand.u32 4294901760, %v135_v12  ;;  %v178_v19 = vsub.f32 %v176_v10, %v177_v14  ;;  %v623_v35 = vand.u32 4294901760, %v2572_v26  ;;  %v630_v39 = vand.u32 4294901760, %v2578_v31 }
  0x15   :  { %v610_v34 = vsub.f32 %v2561_v15, %v609_v25  ;;  %v617_v38 = vsub.f32 %v2566_v20, %v616_v30  ;;  %v2602_v40 = vsub.f32 %v37_v23, %v2580_v32  ;;  %v2604_v41 = vand.u32 4294901760, %v35_v33 }
  0x16   :  { %v137_v22 = vsub.f32 %v135_v12, %v136_v17  ;;  %v179_v24 = vand.u32 4294901760, %v178_v19  ;;  %v624_v43 = vsub.f32 %v2572_v26, %v623_v35  ;;  %v637_v44 = vand.u32 4294901760, %v2588_v36 }
  0x17   :  { %v611_v42 = vand.u32 4294901760, %v610_v34  ;;  %v2612_v45 = vsub.f32 %v36_v29, %v2590_v37  ;;  %v618_v46 = vand.u32 4294901760, %v617_v38  ;;  %v631_v47 = vsub.f32 %v2578_v31, %v630_v39 }
  0x18   :  { %v138_v28 = vand.u32 4294901760, %v137_v22  ;;  %2046 = vmatpush3.msra.mxu1 %v179_v24  ;;  %v644_v48 = vand.u32 4294901760, %v2602_v40  ;;  %v2624_v49 = vsub.f32 %v35_v33, %v2604_v41  ;;  %v625_v50 = vand.u32 4294901760, %v624_v43  ;;  %v28_v43 = vld [vmem:[#allocation2 + $0x88] sm:$0xff] }
  0x19   :  { %2048 = vmatmul.mubr.f32.vlgmr.msra.gmra.mxu1 %v134_v8  ;;  %2055 = vmatprep.subr.mxu1 %v2525_v0  ;;  %v638_v51 = vsub.f32 %v2588_v36, %v637_v44  ;;  %v651_v52 = vand.u32 4294901760, %v2612_v45  ;;  %v632_v53 = vand.u32 4294901760, %v631_v47  ;;  %v2669_v63 = vand.u32 4294901760, %v34_v62 }
  0x1a   :  { %2043 = vmatmul.mubr.f32.vlgmr.msra.gmra.mxu0 %v138_v28  ;;  %2056 = vmatpush3.msra.mxu1 %v99_v4  ;;  %v645_v54 = vsub.f32 %v2602_v40, %v644_v48  ;;  %v658_v55 = vand.u32 4294901760, %v2624_v49  ;;  %v2674_v3 = vand.u32 4294901760, %v33_v1  ;;  %v29_v28 = vld [vmem:[#allocation2 + $0x90] sm:$0xff] }
  0x1b   :  { %2051 = vmatpush3.msra.mxu0 %v176_v10  ;;  %2052 = vmatprep.mubr.msk.f32.mxu0 %vm2526_vm0, %v2525_v0  ;;  %v639_v56 = vand.u32 4294901760, %v638_v51  ;;  %v652_v57 = vsub.f32 %v2612_v45, %v651_v52  ;;  %v2672_v2 = vsub.f32 %v34_v62, %v2669_v63  ;;  %v2712_v38 = vand.u32 4294901760, %v29_v28 }
  0x1c   :  { %2057 = vmatprep.mubr.msk.f32.mxu1 %vm2526_vm0, %v2525_v0  ;;  %2060 = vmatprep.subr.mxu0 %v2525_v0  ;;  %v646_v58 = vand.u32 4294901760, %v645_v54  ;;  %v659_v59 = vsub.f32 %v2624_v49, %v658_v55  ;;  %v2680_v7 = vsub.f32 %v33_v1, %v2674_v3  ;;  %v2725_v51 = vand.u32 4294901760, %v28_v43  ;;  %v27_v54 = vld [vmem:[#allocation2 + $0x80] sm:$0xff] }
  0x1d   :  { %2058 = vmatmul.mubr.f32.vlgmr.msra.gmra.mxu1 %v136_v17  ;;  %2065 = vmatprep.subr.mxu1 %v2525_v0  ;;  %v653_v60 = vand.u32 4294901760, %v652_v57  ;;  %v3308_v5 = vand.u32 4294901760, %v2672_v2  ;;  %v30_v17 = vld [vmem:[#allocation2 + $0x98] sm:$0xff] }
  0x1e   :  { %2053 = vmatmul.mubr.f32.vlgmr.msra.gmra.mxu0 %v135_v12  ;;  %2066 = vmatpush3.msra.mxu1 %v99_v4  ;;  %v660_v61 = vand.u32 4294901760, %v659_v59  ;;  %v32_v4 = vld [vmem:[#allocation2 + $0xa8] sm:$0xff]  ;;  %v3307_v12 = vand.u32 4294901760, %v2680_v7  ;;  %v2705_v24 = vand.u32 4294901760, %v30_v17  ;;  %v2735_v59 = vand.u32 4294901760, %v27_v54 }
  0x1f   :  { %2061 = vmatpush3.msra.mxu0 %v177_v14  ;;  %2062 = vmatprep.mubr.msk.f32.mxu0 %vm2526_vm0, %v2525_v0  ;;  %v666_v10 = vsub.f32 %v2672_v2, %v3308_v5  ;;  %v2693_v14 = vand.u32 4294901760, %v31_v9 }
  0x20   :  { %2067 = vmatprep.mubr.msk.f32.mxu1 %vm2526_vm0, %v2525_v0  ;;  %2105 = vmatprep.subr.mxu1 %v2525_v0  ;;  %v673_v19 = vsub.f32 %v2680_v7, %v3307_v12  ;;  %v2748_v1 = vsub.f32 %v27_v54, %v2735_v59 }
  0x21   :  { %2068 = vmatmul.mubr.f32.vlgmr.msra.gmra.mxu1 %v134_v8  ;;  %2070 = vmatprep.subr.mxu0 %v2525_v0  ;;  %v667_v18 = vand.u32 4294901760, %v666_v10  ;;  %v2702_v23 = vsub.f32 %v31_v9, %v2693_v14 }
  0x22   :  { %2063 = vmatmul.mubr.f32.vlgmr.msra.gmra.mxu0 %v134_v8  ;;  %2106 = vmatpush3.msra.mxu1 %v611_v42  ;;  %v2682_v8 = vand.u32 4294901760, %v32_v4  ;;  %v674_v29 = vand.u32 4294901760, %v673_v19  ;;  %v2716_v42 = vsub.f32 %v30_v17, %v2705_v24  ;;  %v3301_v17 = vand.u32 4294901760, %v2748_v1 }
  0x23   :  { %2107 = vmatprep.subr.mxu1 %v2525_v0  ;;  %2071 = vmatpush3.msra.mxu0 %v2555_v6  ;;  %v3305_v34 = vand.u32 4294901760, %v2702_v23 }
  0x24   :  { %2108 = vmatpush3.msra.mxu1 %v618_v46  ;;  %2072 = vmatprep.subr.mxu0 %v2525_v0  ;;  %v2691_v13 = vsub.f32 %v32_v4, %v2682_v8  ;;  %v715_v19 = vsub.f32 %v2748_v1, %v3301_v17 }
  0x25   :  { %2109 = vmatprep.subr.mxu1 %v2525_v0  ;;  %2073 = vmatpush3.msra.mxu0 %v2557_v11  ;;  %v687_v47 = vsub.f32 %v2702_v23, %v3305_v34 }
  0x26   :  { %2110 = vmatpush3.msra.mxu1 %v625_v50  ;;  %2074 = vmatprep.subr.mxu0 %v2525_v0  ;;  %v3306_v22 = vand.u32 4294901760, %v2691_v13  ;;  %v2723_v50 = vsub.f32 %v29_v28, %v2712_v38  ;;  %v716_v28 = vand.u32 4294901760, %v715_v19 }
  0x27   :  { %2111 = vmatprep.subr.mxu1 %v2525_v0  ;;  %2075 = vmatpush3.msra.mxu0 %v2563_v16 }
  0x28   :  { %2112 = vmatpush3.msra.mxu1 %v632_v53  ;;  %2076 = vmatprep.subr.mxu0 %v2525_v0  ;;  %v680_v33 = vsub.f32 %v2691_v13, %v3306_v22  ;;  %v3304_v53 = vand.u32 4294901760, %v2716_v42  ;;  %v3303_v57 = vand.u32 4294901760, %v2723_v50 }
  0x29   :  { %2113 = vmatprep.subr.mxu1 %v2525_v0  ;;  %2077 = vmatpush3.msra.mxu0 %v2568_v21 }
  0x2a   :  { %2114 = vmatpush3.msra.mxu1 %v639_v56  ;;  %2078 = vmatprep.subr.mxu0 %v2525_v0  ;;  %v681_v46 = vand.u32 4294901760, %v680_v33  ;;  %v688_v56 = vand.u32 4294901760, %v687_v47 }
  0x2b   :  { %2115 = vmatprep.subr.mxu1 %v2525_v0  ;;  %2079 = vmatpush3.msra.mxu0 %v2574_v27 }
  0x2c   :  { %2116 = vmatpush3.msra.mxu1 %v646_v58  ;;  %2080 = vmatprep.subr.mxu0 %v2525_v0  ;;  %v2733_v58 = vsub.f32 %v28_v43, %v2725_v51 }
  0x2d   :  { %2117 = vmatprep.subr.mxu1 %v2525_v0  ;;  %2081 = vmatpush3.msra.mxu0 %v2580_v32 }
  0x2e   :  { %2118 = vmatpush3.msra.mxu1 %v653_v60  ;;  %2082 = vmatprep.subr.mxu0 %v2525_v0  ;;  %v694_v60 = vsub.f32 %v2716_v42, %v3304_v53  ;;  %v3302_v62 = vand.u32 4294901760, %v2733_v58 }
  0x2f   :  { %2119 = vmatprep.subr.mxu1 %v2525_v0  ;;  %2083 = vmatpush3.msra.mxu0 %v2590_v37 }
  0x30   :  { %2120 = vmatpush3.msra.mxu1 %v660_v61  ;;  %2084 = vmatprep.subr.mxu0 %v2525_v0  ;;  %v701_v61 = vsub.f32 %v2723_v50, %v3303_v57  ;;  %v695_v4 = vand.u32 4294901760, %v694_v60  ;;  %v708_v10 = vsub.f32 %v2733_v58, %v3302_v62 }
  0x31   :  { %2121 = vmatprep.subr.mxu1 %v2525_v0  ;;  %2085 = vmatpush3.msra.mxu0 %v2604_v41 }
  0x32   :  { %2086 = vmatprep.subr.mxu0 %v2525_v0  ;;  %2137 = vmatprep.mubr.msk.f32.mxu1 %vm2526_vm0, %v2525_v0  ;;  %v702_v9 = vand.u32 4294901760, %v701_v61 }
  0x33   :  { %2102 = vmatprep.mubr.msk.f32.mxu0 %vm2526_vm0, %v2525_v0  ;;  %2087 = vmatpush3.msra.mxu0 %v2669_v63 }
  0x34   :  { %2088 = vmatprep.subr.mxu0 %v2525_v0  ;;  %2122 = vmatpush3.msra.mxu1 %v667_v18  ;;  %v709_v18 = vand.u32 4294901760, %v708_v10 }
  0x35   :  { %2089 = vmatpush3.msra.mxu0 %v2674_v3  ;;  %2123 = vmatprep.subr.mxu1 %v2525_v0 }
  0x36   :  { %2090 = vmatprep.subr.mxu0 %v2525_v0  ;;  %2124 = vmatpush3.msra.mxu1 %v674_v29  ;;  %v60_v29 = vlaneseq }
  0x37   :  { %2091 = vmatpush3.msra.mxu0 %v2682_v8  ;;  %2125 = vmatprep.subr.mxu1 %v2525_v0 }
  0x38   :  { %2092 = vmatprep.subr.mxu0 %v2525_v0  ;;  %2126 = vmatpush3.msra.mxu1 %v681_v46  ;;  %v2765_v33 = vshrl.u32 %v60_v29, 7  ;;  %v2768_v46 = vld [vmem:[#allocation2 + $0x180] sm:$0xff] }
  0x39   :  { %2093 = vmatpush3.msra.mxu0 %v2693_v14  ;;  %2127 = vmatprep.subr.mxu1 %v2525_v0 }
  0x3a   :  { %2094 = vmatprep.subr.mxu0 %v2525_v0  ;;  %2128 = vmatpush3.msra.mxu1 %v688_v56  ;;  %v62_v43 = vsub.s32 0, %v2765_v33 }
  0x3b   :  { %2095 = vmatpush3.msra.mxu0 %v2705_v24  ;;  %2129 = vmatprep.subr.mxu1 %v2525_v0 }
  0x3c   :  { %2096 = vmatprep.subr.mxu0 %v2525_v0  ;;  %2130 = vmatpush3.msra.mxu1 %v695_v4  ;;  %v63_v47 = vrot.slane %v2768_v46, %v62_v43 }
  0x3d   :  { %2097 = vmatpush3.msra.mxu0 %v2712_v38  ;;  %2131 = vmatprep.subr.mxu1 %v2525_v0 }
  0x3e   :  { %2098 = vmatprep.subr.mxu0 %v2525_v0  ;;  %2132 = vmatpush3.msra.mxu1 %v702_v9 }
  0x3f   :  { %2099 = vmatpush3.msra.mxu0 %v2725_v51  ;;  %2133 = vmatprep.subr.mxu1 %v2525_v0 }
  0x40   :  { %2100 = vmatprep.subr.mxu0 %v2525_v0  ;;  %2134 = vmatpush3.msra.mxu1 %v709_v18 }
  0x41   :  { %2101 = vmatpush3.msra.mxu0 %v2735_v59  ;;  %2135 = vmatprep.subr.mxu1 %v2525_v0 }
  0x42   :  { %2140 = vmatprep.subr.mxu0 %v2525_v0  ;;  %2136 = vmatpush3.msra.mxu1 %v716_v28 }
  0x43   :  { %2175 = vmatprep.subr.mxu1 %v2525_v0 }
  0xd9   :  { %v216_v56 = vpop.f32.mrf.mxu1 }
  0xda   :  { %v140_v54 = vpop.f32.mrf.mxu0 }
  0xdb   :  { %v141_v60 = vadd.f32 %v140_v54, %v63_v47  ;;  %v2049_v4 = vpop.f32.mrf.mxu1 }
  0xdc   :  { %v2044_v61 = vpop.f32.mrf.mxu0 }
  0xdd   :  { %v217_v9 = vadd.f32 %v216_v56, %v141_v60  ;;  %v364_v18 = vpop.f32.mrf.mxu1 }
  0xde   :  { %v290_v10 = vpop.f32.mrf.mxu0 }
  0xdf   :  { %v291_v19 = vadd.f32 %v290_v10, %v217_v9  ;;  %v2059_v17 = vpop.f32.mrf.mxu1 }
  0xe0   :  { %v2054_v28 = vpop.f32.mrf.mxu0 }
  0xe1   :  { %v365_v62 = vadd.f32 %v364_v18, %v291_v19  ;;  %v510_v57 = vpop.f32.mrf.mxu1  ;;  %v50_v18 = vld [vmem:[#allocation2 + $0x138] sm:$0xff] }
  0xe2   :  { %v438_v29 = vpop.f32.mrf.mxu0 }
  0xe3   :  { %v439_v53 = vadd.f32 %v438_v29, %v365_v62  ;;  %v2069_v22 = vpop.f32.mrf.mxu1  ;;  %v3027_v29 = vand.u32 4294901760, %v50_v18 }
  0xe4   :  { %v2064_v34 = vpop.f32.mrf.mxu0 }
  0xe5   :  { %v511_v12 = vadd.f32 %v510_v57, %v439_v53 }
  0xe7   :  { %v514_v5 = vmax.f32 %v511_v12, 0.0 }
  0xe9   :  { %v2771_v43 = vand.u32 4294901760, %v514_v5 }
  0xeb   :  { %v2774_v47 = vsub.f32 %v514_v5, %v2771_v43  ;;  %2138 = vmatmul.mubr.f32.vlgmr.msra.gmra.mxu1 %v2771_v43 }
  0xec   :  { %2176 = vmatpush3.msra.mxu1 %v2555_v6  ;;  %2207 = vmatprep.mubr.msk.f32.mxu1 %vm2526_vm0, %v2525_v0 }
  0xed   :  { %v598_v17 = vand.u32 4294901760, %v2774_v47  ;;  %2177 = vmatprep.subr.mxu1 %v2525_v0 }
  0xee   :  { %2178 = vmatpush3.msra.mxu1 %v2557_v11 }
  0xef   :  { %v599_v12 = vsub.f32 %v2774_v47, %v598_v17  ;;  %2179 = vmatprep.subr.mxu1 %v2525_v0 }
  0xf0   :  { %2180 = vmatpush3.msra.mxu1 %v2563_v16 }
  0xf1   :  { %2181 = vmatprep.subr.mxu1 %v2525_v0  ;;  %v600_v5 = vand.u32 4294901760, %v599_v12 }
  0xf2   :  { %2182 = vmatpush3.msra.mxu1 %v2568_v21 }
  0xf3   :  { %2183 = vmatprep.subr.mxu1 %v2525_v0  ;;  %2103 = vmatmul.mubr.f32.vlgmr.msra.gmra.mxu0 %v600_v5  ;;  %v48_v5 = vld [vmem:[#allocation2 + $0x128] sm:$0xff] }
  0xf4   :  { %2141 = vmatpush3.msra.mxu0 %v2561_v15  ;;  %2184 = vmatpush3.msra.mxu1 %v2574_v27  ;;  %v3317_v15 = vand.u32 4294901760, %v2691_v13 }
  0xf5   :  { %2142 = vmatprep.subr.mxu0 %v2525_v0  ;;  %2185 = vmatprep.subr.mxu1 %v2525_v0 }
  0xf6   :  { %2143 = vmatpush3.msra.mxu0 %v2566_v20  ;;  %2186 = vmatpush3.msra.mxu1 %v2580_v32  ;;  %v3319_v20 = vand.u32 4294901760, %v2716_v42 }
  0xf7   :  { %2144 = vmatprep.subr.mxu0 %v2525_v0  ;;  %2187 = vmatprep.subr.mxu1 %v2525_v0 }
  0xf8   :  { %2145 = vmatpush3.msra.mxu0 %v2572_v26  ;;  %2188 = vmatpush3.msra.mxu1 %v2590_v37  ;;  %v3322_v26 = vand.u32 4294901760, %v2748_v1 }
  0xf9   :  { %2146 = vmatprep.subr.mxu0 %v2525_v0  ;;  %2189 = vmatprep.subr.mxu1 %v2525_v0 }
  0xfa   :  { %2147 = vmatpush3.msra.mxu0 %v2578_v31  ;;  %2190 = vmatpush3.msra.mxu1 %v2604_v41  ;;  %v57_v31 = vld [vmem:[#allocation2 + $0x170] sm:$0xff] }
  0xfb   :  { %2148 = vmatprep.subr.mxu0 %v2525_v0  ;;  %2191 = vmatprep.subr.mxu1 %v2525_v0 }
  0xfc   :  { %2149 = vmatpush3.msra.mxu0 %v2588_v36  ;;  %2192 = vmatpush3.msra.mxu1 %v2669_v63  ;;  %v56_v36 = vld [vmem:[#allocation2 + $0x168] sm:$0xff] }
  0xfd   :  { %2150 = vmatprep.subr.mxu0 %v2525_v0  ;;  %2193 = vmatprep.subr.mxu1 %v2525_v0 }
  0xfe   :  { %2151 = vmatpush3.msra.mxu0 %v2602_v40  ;;  %2194 = vmatpush3.msra.mxu1 %v2674_v3  ;;  %v2946_v40 = vand.u32 4294901760, %v56_v36 }
  0xff   :  { %2152 = vmatprep.subr.mxu0 %v2525_v0  ;;  %2195 = vmatprep.subr.mxu1 %v2525_v0 }
 0x100   :  { %2153 = vmatpush3.msra.mxu0 %v2612_v45  ;;  %2196 = vmatpush3.msra.mxu1 %v2682_v8  ;;  %v53_v45 = vld [vmem:[#allocation2 + $0x150] sm:$0xff] }
 0x101   :  { %2154 = vmatprep.subr.mxu0 %v2525_v0  ;;  %2197 = vmatprep.subr.mxu1 %v2525_v0 }
 0x102   :  { %2155 = vmatpush3.msra.mxu0 %v2624_v49  ;;  %2198 = vmatpush3.msra.mxu1 %v2693_v14  ;;  %v51_v49 = vld [vmem:[#allocation2 + $0x140] sm:$0xff] }
 0x103   :  { %2156 = vmatprep.subr.mxu0 %v2525_v0  ;;  %2199 = vmatprep.subr.mxu1 %v2525_v0 }
 0x104   :  { %2157 = vmatpush3.msra.mxu0 %v2672_v2  ;;  %2200 = vmatpush3.msra.mxu1 %v2705_v24 }
 0x105   :  { %2158 = vmatprep.subr.mxu0 %v2525_v0  ;;  %2201 = vmatprep.subr.mxu1 %v2525_v0 }
 0x106   :  { %2159 = vmatpush3.msra.mxu0 %v2680_v7  ;;  %2202 = vmatpush3.msra.mxu1 %v2712_v38 }
 0x107   :  { %2160 = vmatprep.subr.mxu0 %v2525_v0  ;;  %2203 = vmatprep.subr.mxu1 %v2525_v0 }
 0x108   :  { %2161 = vmatpush3.msra.mxu0 %v2691_v13  ;;  %2204 = vmatpush3.msra.mxu1 %v2725_v51  ;;  %v2972_v13 = vand.u32 4294901760, %v51_v49 }
 0x109   :  { %2162 = vmatprep.subr.mxu0 %v2525_v0  ;;  %2205 = vmatprep.subr.mxu1 %v2525_v0 }
 0x10a   :  { %2163 = vmatpush3.msra.mxu0 %v2702_v23  ;;  %2206 = vmatpush3.msra.mxu1 %v2735_v59  ;;  %v2995_v57 = vsub.f32 %v51_v49, %v2972_v13  ;;  %v45_v49 = vld [vmem:[#allocation2 + $0x110] sm:$0xff] }
 0x10b   :  { %2164 = vmatprep.subr.mxu0 %v2525_v0  ;;  %2208 = vmatmul.mubr.f32.vlgmr.msra.gmra.mxu1 %v598_v17  ;;  %v3033_v17 = vsub.f32 %v50_v18, %v3027_v29 }
 0x10c   :  { %2245 = vmatprep.subr.mxu1 %v2525_v0  ;;  %2165 = vmatpush3.msra.mxu0 %v2716_v42  ;;  %v1300_v4 = vand.u32 4294901760, %v2995_v57 }
 0x10d   :  { %2246 = vmatpush3.msra.mxu1 %v2555_v6  ;;  %2166 = vmatprep.subr.mxu0 %v2525_v0  ;;  %v3315_v6 = vand.u32 4294901760, %v2672_v2 }
 0x10e   :  { %2247 = vmatprep.subr.mxu1 %v2525_v0  ;;  %2167 = vmatpush3.msra.mxu0 %v2723_v50  ;;  %v1301_v28 = vsub.f32 %v2995_v57, %v1300_v4 }
 0x10f   :  { %2248 = vmatpush3.msra.mxu1 %v2557_v11  ;;  %2168 = vmatprep.subr.mxu0 %v2525_v0  ;;  %v3316_v11 = vand.u32 4294901760, %v2680_v7 }
 0x110   :  { %2249 = vmatprep.subr.mxu1 %v2525_v0  ;;  %2169 = vmatpush3.msra.mxu0 %v2733_v58 }
 0x111   :  { %2250 = vmatpush3.msra.mxu1 %v2563_v16  ;;  %2170 = vmatprep.subr.mxu0 %v2525_v0  ;;  %v3318_v16 = vand.u32 4294901760, %v2702_v23 }
 0x112   :  { %2251 = vmatprep.subr.mxu1 %v2525_v0  ;;  %2171 = vmatpush3.msra.mxu0 %v2748_v1 }
 0x113   :  { %2172 = vmatprep.mubr.msk.f32.mxu0 %vm2526_vm0, %v2525_v0  ;;  %2252 = vmatpush3.msra.mxu1 %v2568_v21  ;;  %v3320_v21 = vand.u32 4294901760, %v2723_v50 }
 0x114   :  { %2173 = vmatmul.mubr.f32.vlgmr.msra.gmra.mxu0 %v2774_v47  ;;  %2210 = vmatprep.subr.mxu0 %v2525_v0 }
 0x115   :  { %2253 = vmatprep.subr.mxu1 %v2525_v0  ;;  %2211 = vmatpush3.msra.mxu0 %v609_v25  ;;  %v3321_v25 = vand.u32 4294901760, %v2733_v58 }
 0x116   :  { %2254 = vmatpush3.msra.mxu1 %v2574_v27  ;;  %2212 = vmatprep.subr.mxu0 %v2525_v0  ;;  %v58_v27 = vld [vmem:[#allocation2 + $0x178] sm:$0xff] }
 0x117   :  { %2255 = vmatprep.subr.mxu1 %v2525_v0  ;;  %2213 = vmatpush3.msra.mxu0 %v616_v30  ;;  %v2938_v30 = vand.u32 4294901760, %v58_v27 }
 0x118   :  { %2256 = vmatpush3.msra.mxu1 %v2580_v32  ;;  %2214 = vmatprep.subr.mxu0 %v2525_v0 }
 0x119   :  { %2257 = vmatprep.subr.mxu1 %v2525_v0  ;;  %2215 = vmatpush3.msra.mxu0 %v623_v35  ;;  %v2941_v32 = vsub.f32 %v58_v27, %v2938_v30  ;;  %v2943_v35 = vand.u32 4294901760, %v57_v31 }
 0x11a   :  { %2258 = vmatpush3.msra.mxu1 %v2590_v37  ;;  %2216 = vmatprep.subr.mxu0 %v2525_v0  ;;  %v55_v37 = vld [vmem:[#allocation2 + $0x160] sm:$0xff] }
 0x11b   :  { %2259 = vmatprep.subr.mxu1 %v2525_v0  ;;  %2217 = vmatpush3.msra.mxu0 %v630_v39  ;;  %v54_v39 = vld [vmem:[#allocation2 + $0x158] sm:$0xff] }
 0x11c   :  { %2260 = vmatpush3.msra.mxu1 %v2604_v41  ;;  %2218 = vmatprep.subr.mxu0 %v2525_v0  ;;  %v2948_v41 = vand.u32 4294901760, %v55_v37 }
 0x11d   :  { %2261 = vmatprep.subr.mxu1 %v2525_v0  ;;  %2219 = vmatpush3.msra.mxu0 %v637_v44  ;;  %v2950_v44 = vand.u32 4294901760, %v54_v39 }
 0x11e   :  { %2262 = vmatpush3.msra.mxu1 %v2669_v63  ;;  %2220 = vmatprep.subr.mxu0 %v2525_v0  ;;  %v2958_v63 = vand.u32 4294901760, %v53_v45  ;;  %v2966_v7 = vsub.f32 %v55_v37, %v2948_v41 }
 0x11f   :  { %2263 = vmatprep.subr.mxu1 %v2525_v0  ;;  %2221 = vmatpush3.msra.mxu0 %v644_v48  ;;  %v52_v48 = vld [vmem:[#allocation2 + $0x148] sm:$0xff] }
 0x120   :  { %2264 = vmatpush3.msra.mxu1 %v2674_v3  ;;  %2222 = vmatprep.subr.mxu0 %v2525_v0  ;;  %v2960_v2 = vand.u32 4294901760, %v52_v48  ;;  %v2963_v3 = vsub.f32 %v56_v36, %v2946_v40  ;;  %v2979_v23 = vsub.f32 %v53_v45, %v2958_v63 }
 0x121   :  { %2265 = vmatprep.subr.mxu1 %v2525_v0  ;;  %2223 = vmatpush3.msra.mxu0 %v651_v52  ;;  %v1251_v52 = vand.u32 4294901760, %v2941_v32 }
 0x122   :  { %2266 = vmatpush3.msra.mxu1 %v2682_v8  ;;  %2224 = vmatprep.subr.mxu0 %v2525_v0  ;;  %v2969_v8 = vsub.f32 %v54_v39, %v2950_v44  ;;  %v1265_v34 = vand.u32 4294901760, %v2963_v3  ;;  %v1286_v53 = vand.u32 4294901760, %v2979_v23 }
 0x123   :  { %2267 = vmatprep.subr.mxu1 %v2525_v0  ;;  %2225 = vmatpush3.msra.mxu0 %v658_v55  ;;  %v2955_v55 = vsub.f32 %v57_v31, %v2943_v35  ;;  %v46_v31 = vld [vmem:[#allocation2 + $0x118] sm:$0xff] }
 0x124   :  { %2268 = vmatpush3.msra.mxu1 %v2693_v14  ;;  %2226 = vmatprep.subr.mxu0 %v2525_v0  ;;  %v1252_v14 = vsub.f32 %v2941_v32, %v1251_v52  ;;  %v1279_v42 = vand.u32 4294901760, %v2969_v8  ;;  %v1266_v58 = vsub.f32 %v2963_v3, %v1265_v34  ;;  %v1287_v61 = vsub.f32 %v2979_v23, %v1286_v53 }
 0x125   :  { %2269 = vmatprep.subr.mxu1 %v2525_v0  ;;  %2227 = vmatpush3.msra.mxu0 %v3315_v6  ;;  %v1258_v22 = vand.u32 4294901760, %v2955_v55  ;;  %v1302_v6 = vand.u32 4294901760, %v1301_v28 }
 0x126   :  { %2270 = vmatpush3.msra.mxu1 %v2705_v24  ;;  %2228 = vmatprep.subr.mxu0 %v2525_v0  ;;  %v2983_v24 = vsub.f32 %v52_v48, %v2960_v2  ;;  %v1253_v50 = vand.u32 4294901760, %v1252_v14  ;;  %v1280_v1 = vsub.f32 %v2969_v8, %v1279_v42  ;;  %v1267_v56 = vand.u32 4294901760, %v1266_v58 }
 0x127   :  { %2271 = vmatprep.subr.mxu1 %v2525_v0  ;;  %2229 = vmatpush3.msra.mxu0 %v3316_v11  ;;  %v1288_v19 = vand.u32 4294901760, %v1287_v61  ;;  %v1307_v11 = vand.u32 4294901760, %v3033_v17  ;;  %v3070_v48 = vand.u32 4294901760, %v46_v31  ;;  %v3077_v58 = vand.u32 4294901760, %v45_v49 }
 0x128   :  { %2272 = vmatpush3.msra.mxu1 %v2712_v38  ;;  %2230 = vmatprep.subr.mxu0 %v2525_v0  ;;  %v1272_v38 = vand.u32 4294901760, %v2966_v7  ;;  %v1293_v54 = vand.u32 4294901760, %v2983_v24  ;;  %v1281_v9 = vand.u32 4294901760, %v1280_v1 }
 0x129   :  { %2273 = vmatprep.subr.mxu1 %v2525_v0  ;;  %2231 = vmatpush3.msra.mxu0 %v3317_v15 }
 0x12a   :  { %2274 = vmatpush3.msra.mxu1 %v2725_v51  ;;  %2232 = vmatprep.subr.mxu0 %v2525_v0  ;;  %v1259_v51 = vsub.f32 %v2955_v55, %v1258_v22  ;;  %v1294_v10 = vsub.f32 %v2983_v24, %v1293_v54 }
 0x12b   :  { %2275 = vmatprep.subr.mxu1 %v2525_v0  ;;  %2233 = vmatpush3.msra.mxu0 %v3318_v16  ;;  %v3044_v16 = vand.u32 4294901760, %v48_v5 }
 0x12c   :  { %2276 = vmatpush3.msra.mxu1 %v2735_v59  ;;  %2277 = vmatprep.mubr.msk.f32.mxu1 %vm2526_vm0, %v2525_v0  ;;  %v1273_v59 = vsub.f32 %v2966_v7, %v1272_v38  ;;  %v1260_v62 = vand.u32 4294901760, %v1259_v51  ;;  %v1295_v47 = vand.u32 4294901760, %v1294_v10  ;;  %v43_v10 = vld [vmem:[#allocation2 + $0x100] sm:$0xff] }
 0x12d   :  { %2234 = vmatprep.subr.mxu0 %v2525_v0  ;;  %2278 = vmatmul.mubr.f32.vlgmr.msra.gmra.mxu1 %v2771_v43 }
 0x12e   :  { %2235 = vmatpush3.msra.mxu0 %v3319_v20  ;;  %2242 = vmatprep.mubr.msk.f32.mxu0 %vm2526_vm0, %v2525_v0  ;;  %v1274_v60 = vand.u32 4294901760, %v1273_v59  ;;  %v47_v20 = vld [vmem:[#allocation2 + $0x120] sm:$0xff]  ;;  %v3081_v59 = vsub.f32 %v46_v31, %v3070_v48 }
 0x12f   :  { %2236 = vmatprep.subr.mxu0 %v2525_v0  ;;  %2315 = vmatprep.subr.mxu1 %v2525_v0  ;;  %v3056_v27 = vand.u32 4294901760, %v47_v20 }
 0x130   :  { %2237 = vmatpush3.msra.mxu0 %v3320_v21  ;;  %2347 = vmatprep.mubr.msk.f32.mxu1 %vm2526_vm0, %v2525_v0  ;;  %v1308_v21 = vsub.f32 %v3033_v17, %v1307_v11 }
 0x131   :  { %2238 = vmatprep.subr.mxu0 %v2525_v0  ;;  %2316 = vmatpush3.msra.mxu1 %v1253_v50  ;;  %v3066_v45 = vsub.f32 %v47_v20, %v3056_v27 }
 0x132   :  { %2239 = vmatpush3.msra.mxu0 %v3321_v25  ;;  %2317 = vmatprep.subr.mxu1 %v2525_v0  ;;  %v1309_v36 = vand.u32 4294901760, %v1308_v21 }
 0x133   :  { %2240 = vmatprep.subr.mxu0 %v2525_v0  ;;  %2318 = vmatpush3.msra.mxu1 %v1260_v62  ;;  %v3313_v51 = vand.u32 4294901760, %v3066_v45  ;;  %v44_v62 = vld [vmem:[#allocation2 + $0x108] sm:$0xff] }
 0x134   :  { %2241 = vmatpush3.msra.mxu0 %v3322_v26  ;;  %2319 = vmatprep.subr.mxu1 %v2525_v0  ;;  %v3054_v26 = vsub.f32 %v48_v5, %v3044_v16  ;;  %v3090_v61 = vand.u32 4294901760, %v44_v62 }
 0x135   :  { %2243 = vmatmul.mubr.f32.vlgmr.msra.gmra.mxu0 %v2771_v43  ;;  %2280 = vmatprep.subr.mxu0 %v2525_v0  ;;  %v49_v43 = vld [vmem:[#allocation2 + $0x130] sm:$0xff] }
 0x136   :  { %2312 = vmatprep.mubr.msk.f32.mxu0 %vm2526_vm0, %v2525_v0  ;;  %2281 = vmatpush3.msra.mxu0 %v2938_v30  ;;  %v3035_v12 = vand.u32 4294901760, %v49_v43  ;;  %v3314_v39 = vand.u32 4294901760, %v3054_v26  ;;  %v3098_v28 = vsub.f32 %v44_v62, %v3090_v61 }
 0x137   :  { %2282 = vmatprep.subr.mxu0 %v2525_v0  ;;  %2320 = vmatpush3.msra.mxu1 %v1267_v56  ;;  %v1329_v56 = vsub.f32 %v3066_v45, %v3313_v51 }
 0x138   :  { %2283 = vmatpush3.msra.mxu0 %v2943_v35  ;;  %2321 = vmatprep.subr.mxu1 %v2525_v0  ;;  %v3042_v15 = vsub.f32 %v49_v43, %v3035_v12  ;;  %v1322_v50 = vsub.f32 %v3054_v26, %v3314_v39  ;;  %v3100_v43 = vand.u32 4294901760, %v43_v10 }
 0x139   :  { %2284 = vmatprep.subr.mxu0 %v2525_v0  ;;  %2322 = vmatpush3.msra.mxu1 %v1274_v60  ;;  %v3088_v60 = vsub.f32 %v45_v49, %v3077_v58  ;;  %v1330_v18 = vand.u32 4294901760, %v1329_v56 }
 0x13a   :  { %2285 = vmatpush3.msra.mxu0 %v2946_v40  ;;  %2323 = vmatprep.subr.mxu1 %v2525_v0  ;;  %v1314_v25 = vand.u32 4294901760, %v3042_v15  ;;  %v1323_v1 = vand.u32 4294901760, %v1322_v50  ;;  %v3113_v20 = vsub.f32 %v43_v10, %v3100_v43 }
 0x13b   :  { %2286 = vmatprep.subr.mxu0 %v2525_v0  ;;  %2324 = vmatpush3.msra.mxu1 %v1281_v9  ;;  %v3312_v9 = vand.u32 4294901760, %v3081_v59 }
 0x13c   :  { %2287 = vmatpush3.msra.mxu0 %v2948_v41  ;;  %2325 = vmatprep.subr.mxu1 %v2525_v0  ;;  %v1315_v37 = vsub.f32 %v3042_v15, %v1314_v25 }
 0x13d   :  { %2288 = vmatprep.subr.mxu0 %v2525_v0  ;;  %2326 = vmatpush3.msra.mxu1 %v1288_v19  ;;  %v3311_v19 = vand.u32 4294901760, %v3088_v60 }
 0x13e   :  { %2289 = vmatpush3.msra.mxu0 %v2950_v44  ;;  %2327 = vmatprep.subr.mxu1 %v2525_v0  ;;  %v1316_v14 = vand.u32 4294901760, %v1315_v37  ;;  %v3309_v37 = vand.u32 4294901760, %v3113_v20 }
 0x13f   :  { %2290 = vmatprep.subr.mxu0 %v2525_v0  ;;  %2328 = vmatpush3.msra.mxu1 %v1295_v47  ;;  %v1336_v47 = vsub.f32 %v3081_v59, %v3312_v9  ;;  %v1343_v5 = vsub.f32 %v3088_v60, %v3311_v19 }
 0x140   :  { %2291 = vmatpush3.msra.mxu0 %v2958_v63  ;;  %2329 = vmatprep.subr.mxu1 %v2525_v0 }
 0x141   :  { %2292 = vmatprep.subr.mxu0 %v2525_v0  ;;  %2330 = vmatpush3.msra.mxu1 %v1302_v6  ;;  %v3310_v6 = vand.u32 4294901760, %v3098_v28  ;;  %v1337_v21 = vand.u32 4294901760, %v1336_v47  ;;  %v1344_v31 = vand.u32 4294901760, %v1343_v5 }
 0x142   :  { %2293 = vmatpush3.msra.mxu0 %v2960_v2  ;;  %2331 = vmatprep.subr.mxu1 %v2525_v0 }
 0x143   :  { %2294 = vmatprep.subr.mxu0 %v2525_v0  ;;  %2332 = vmatpush3.msra.mxu1 %v1309_v36  ;;  %v1350_v36 = vsub.f32 %v3098_v28, %v3310_v6 }
 0x144   :  { %2295 = vmatpush3.msra.mxu0 %v2972_v13  ;;  %2333 = vmatprep.subr.mxu1 %v2525_v0 }
 0x145   :  { %2296 = vmatprep.subr.mxu0 %v2525_v0  ;;  %2334 = vmatpush3.msra.mxu1 %v1316_v14  ;;  %v1351_v49 = vand.u32 4294901760, %v1350_v36  ;;  %v1357_v14 = vsub.f32 %v3113_v20, %v3309_v37 }
 0x146   :  { %2297 = vmatpush3.msra.mxu0 %v3027_v29  ;;  %2335 = vmatprep.subr.mxu1 %v2525_v0 }
 0x147   :  { %2298 = vmatprep.subr.mxu0 %v2525_v0  ;;  %2336 = vmatpush3.msra.mxu1 %v1323_v1  ;;  %v1358_v50 = vand.u32 4294901760, %v1357_v14 }
 0x148   :  { %2299 = vmatpush3.msra.mxu0 %v3035_v12  ;;  %2337 = vmatprep.subr.mxu1 %v2525_v0 }
 0x149   :  { %2300 = vmatprep.subr.mxu0 %v2525_v0  ;;  %2338 = vmatpush3.msra.mxu1 %v1330_v18 }
 0x14a   :  { %2301 = vmatpush3.msra.mxu0 %v3044_v16  ;;  %2339 = vmatprep.subr.mxu1 %v2525_v0 }
 0x14b   :  { %2302 = vmatprep.subr.mxu0 %v2525_v0  ;;  %2340 = vmatpush3.msra.mxu1 %v1337_v21 }
 0x14c   :  { %2303 = vmatpush3.msra.mxu0 %v3056_v27  ;;  %2341 = vmatprep.subr.mxu1 %v2525_v0 }
 0x14d   :  { %2304 = vmatprep.subr.mxu0 %v2525_v0  ;;  %2342 = vmatpush3.msra.mxu1 %v1344_v31 }
 0x14e   :  { %2305 = vmatpush3.msra.mxu0 %v3070_v48  ;;  %2343 = vmatprep.subr.mxu1 %v2525_v0 }
 0x14f   :  { %2306 = vmatprep.subr.mxu0 %v2525_v0  ;;  %2344 = vmatpush3.msra.mxu1 %v1351_v49 }
 0x150   :  { %2307 = vmatpush3.msra.mxu0 %v3077_v58  ;;  %2345 = vmatprep.subr.mxu1 %v2525_v0 }
 0x151   :  { %2308 = vmatprep.subr.mxu0 %v2525_v0  ;;  %2346 = vmatpush3.msra.mxu1 %v1358_v50 }
 0x152   :  { %2309 = vmatpush3.msra.mxu0 %v3090_v61  ;;  %2385 = vmatprep.subr.mxu1 %v2525_v0 }
 0x153   :  { %2310 = vmatprep.subr.mxu0 %v2525_v0 }
 0x154   :  { %2311 = vmatpush3.msra.mxu0 %v3100_v43 }
 0x155   :  { %2350 = vmatprep.subr.mxu0 %v2525_v0 }
 0x1ab   :  { %v753_v62 = vpop.f32.mrf.mxu1 }
 0x1ad   :  { %v2139_v1 = vpop.f32.mrf.mxu1 }
 0x1b3   :  { %v602_v56 = vpop.f32.mrf.mxu0 }
 0x1b4   :  { %v754_v37 = vadd.f32 %v753_v62, %v602_v56 }
 0x1b5   :  { %v2104_v10 = vpop.f32.mrf.mxu0 }
 0x1cb   :  { %v946_v18 = vpop.f32.mrf.mxu1 }
 0x1cd   :  { %v2209_v47 = vpop.f32.mrf.mxu1 }
 0x1d4   :  { %v857_v5 = vpop.f32.mrf.mxu0 }
 0x1d5   :  { %v858_v6 = vadd.f32 %v857_v5, %v754_v37 }
 0x1d6   :  { %v2174_v21 = vpop.f32.mrf.mxu0 }
 0x1d7   :  { %v947_v19 = vadd.f32 %v946_v18, %v858_v6 }
 0x1ed   :  { %v1152_v36 = vpop.f32.mrf.mxu1 }
 0x1ef   :  { %v2279_v31 = vpop.f32.mrf.mxu1 }
 0x1f5   :  { %v1065_v14 = vpop.f32.mrf.mxu0 }
 0x1f6   :  { %v1066_v49 = vadd.f32 %v1065_v14, %v947_v19 }
 0x1f7   :  { %v2244_v9 = vpop.f32.mrf.mxu0 }
 0x1f8   :  { %v1153_v51 = vadd.f32 %v1152_v36, %v1066_v49 }
 0x1fa   :  { %v1156_v50 = vmax.f32 %v1153_v51, 0.0 }
 0x1fc   :  { %v3130_v39 = vand.u32 4294901760, %v1156_v50 }
 0x1fe   :  { %v3133_v1 = vsub.f32 %v1156_v50, %v3130_v39  ;;  %2348 = vmatmul.mubr.f32.vlgmr.msra.gmra.mxu1 %v3130_v39 }
 0x1ff   :  { %2386 = vmatpush3.msra.mxu1 %v2938_v30  ;;  %2417 = vmatprep.mubr.msk.f32.mxu1 %vm2526_vm0, %v2525_v0 }
 0x200   :  { %v1240_v37 = vand.u32 4294901760, %v3133_v1  ;;  %2387 = vmatprep.subr.mxu1 %v2525_v0 }
 0x201   :  { %2388 = vmatpush3.msra.mxu1 %v2943_v35 }
 0x202   :  { %2389 = vmatprep.subr.mxu1 %v2525_v0  ;;  %v1241_v51 = vsub.f32 %v3133_v1, %v1240_v37 }
 0x203   :  { %2390 = vmatpush3.msra.mxu1 %v2946_v40 }
 0x204   :  { %2391 = vmatprep.subr.mxu1 %v2525_v0  ;;  %v1242_v9 = vand.u32 4294901760, %v1241_v51 }
 0x205   :  { %2392 = vmatpush3.msra.mxu1 %v2948_v41 }
 0x206   :  { %2393 = vmatprep.subr.mxu1 %v2525_v0  ;;  %2313 = vmatmul.mubr.f32.vlgmr.msra.gmra.mxu0 %v1242_v9 }
 0x207   :  { %2351 = vmatpush3.msra.mxu0 %v2941_v32  ;;  %2394 = vmatpush3.msra.mxu1 %v2950_v44  ;;  %v3324_v32 = vand.u32 4294901760, %v3066_v45 }
 0x208   :  { %2352 = vmatprep.subr.mxu0 %v2525_v0  ;;  %2395 = vmatprep.subr.mxu1 %v2525_v0 }
 0x209   :  { %2353 = vmatpush3.msra.mxu0 %v2955_v55  ;;  %2396 = vmatpush3.msra.mxu1 %v2958_v63 }
 0x20a   :  { %2354 = vmatprep.subr.mxu0 %v2525_v0  ;;  %2397 = vmatprep.subr.mxu1 %v2525_v0 }
 0x20b   :  { %2355 = vmatpush3.msra.mxu0 %v2963_v3  ;;  %2398 = vmatpush3.msra.mxu1 %v2960_v2 }
 0x20c   :  { %2356 = vmatprep.subr.mxu0 %v2525_v0  ;;  %2399 = vmatprep.subr.mxu1 %v2525_v0 }
 0x20d   :  { %2357 = vmatpush3.msra.mxu0 %v2966_v7  ;;  %2400 = vmatpush3.msra.mxu1 %v2972_v13 }
 0x20e   :  { %2358 = vmatprep.subr.mxu0 %v2525_v0  ;;  %2401 = vmatprep.subr.mxu1 %v2525_v0 }
 0x20f   :  { %2359 = vmatpush3.msra.mxu0 %v2969_v8  ;;  %2402 = vmatpush3.msra.mxu1 %v3027_v29 }
 0x210   :  { %2360 = vmatprep.subr.mxu0 %v2525_v0  ;;  %2403 = vmatprep.subr.mxu1 %v2525_v0 }
 0x211   :  { %2361 = vmatpush3.msra.mxu0 %v2979_v23  ;;  %2404 = vmatpush3.msra.mxu1 %v3035_v12 }
 0x212   :  { %2362 = vmatprep.subr.mxu0 %v2525_v0  ;;  %2405 = vmatprep.subr.mxu1 %v2525_v0 }
 0x213   :  { %2363 = vmatpush3.msra.mxu0 %v2983_v24  ;;  %2406 = vmatpush3.msra.mxu1 %v3044_v16 }
 0x214   :  { %2364 = vmatprep.subr.mxu0 %v2525_v0  ;;  %2407 = vmatprep.subr.mxu1 %v2525_v0 }
 0x215   :  { %2365 = vmatpush3.msra.mxu0 %v2995_v57  ;;  %2408 = vmatpush3.msra.mxu1 %v3056_v27 }
 0x216   :  { %2366 = vmatprep.subr.mxu0 %v2525_v0  ;;  %2409 = vmatprep.subr.mxu1 %v2525_v0 }
 0x217   :  { %2367 = vmatpush3.msra.mxu0 %v3033_v17  ;;  %2410 = vmatpush3.msra.mxu1 %v3070_v48 }
 0x218   :  { %2368 = vmatprep.subr.mxu0 %v2525_v0  ;;  %2411 = vmatprep.subr.mxu1 %v2525_v0 }
 0x219   :  { %2369 = vmatpush3.msra.mxu0 %v3042_v15  ;;  %2412 = vmatpush3.msra.mxu1 %v3077_v58 }
 0x21a   :  { %2370 = vmatprep.subr.mxu0 %v2525_v0  ;;  %2413 = vmatprep.subr.mxu1 %v2525_v0 }
 0x21b   :  { %2371 = vmatpush3.msra.mxu0 %v3054_v26  ;;  %2414 = vmatpush3.msra.mxu1 %v3090_v61 }
 0x21c   :  { %2372 = vmatprep.subr.mxu0 %v2525_v0  ;;  %2415 = vmatprep.subr.mxu1 %v2525_v0 }
 0x21d   :  { %2373 = vmatpush3.msra.mxu0 %v3066_v45  ;;  %2416 = vmatpush3.msra.mxu1 %v3100_v43 }
 0x21e   :  { %2374 = vmatprep.subr.mxu0 %v2525_v0  ;;  %2418 = vmatmul.mubr.f32.vlgmr.msra.gmra.mxu1 %v1240_v37 }
 0x21f   :  { %2455 = vmatprep.subr.mxu1 %v2525_v0  ;;  %2375 = vmatpush3.msra.mxu0 %v3081_v59 }
 0x220   :  { %2456 = vmatpush3.msra.mxu1 %v2938_v30  ;;  %2376 = vmatprep.subr.mxu0 %v2525_v0  ;;  %v3323_v30 = vand.u32 4294901760, %v3054_v26  ;;  %v2499_v26 = vld [vmem:[#allocation2 + $0x180] sm:$0xff] }
 0x221   :  { %2457 = vmatprep.subr.mxu1 %v2525_v0  ;;  %2377 = vmatpush3.msra.mxu0 %v3088_v60 }
 0x222   :  { %2458 = vmatpush3.msra.mxu1 %v2943_v35  ;;  %2378 = vmatprep.subr.mxu0 %v2525_v0  ;;  %v3325_v35 = vand.u32 4294901760, %v3081_v59 }
 0x223   :  { %2459 = vmatprep.subr.mxu1 %v2525_v0  ;;  %2379 = vmatpush3.msra.mxu0 %v3098_v28 }
 0x224   :  { %2460 = vmatpush3.msra.mxu1 %v2946_v40  ;;  %2380 = vmatprep.subr.mxu0 %v2525_v0  ;;  %v3326_v40 = vand.u32 4294901760, %v3088_v60 }
 0x225   :  { %2461 = vmatprep.subr.mxu1 %v2525_v0  ;;  %2381 = vmatpush3.msra.mxu0 %v3113_v20 }
 0x226   :  { %2382 = vmatprep.mubr.msk.f32.mxu0 %vm2526_vm0, %v2525_v0  ;;  %2462 = vmatpush3.msra.mxu1 %v2948_v41  ;;  %v3327_v41 = vand.u32 4294901760, %v3098_v28 }
 0x227   :  { %2383 = vmatmul.mubr.f32.vlgmr.msra.gmra.mxu0 %v3133_v1  ;;  %2420 = vmatprep.subr.mxu0 %v2525_v0 }
 0x228   :  { %2463 = vmatprep.subr.mxu1 %v2525_v0  ;;  %2421 = vmatpush3.msra.mxu0 %v1251_v52 }
 0x229   :  { %2464 = vmatpush3.msra.mxu1 %v2950_v44  ;;  %2422 = vmatprep.subr.mxu0 %v2525_v0  ;;  %v3328_v44 = vand.u32 4294901760, %v3113_v20 }
 0x22a   :  { %2465 = vmatprep.subr.mxu1 %v2525_v0  ;;  %2423 = vmatpush3.msra.mxu0 %v1258_v22 }
 0x22b   :  { %2466 = vmatpush3.msra.mxu1 %v2958_v63  ;;  %2424 = vmatprep.subr.mxu0 %v2525_v0 }
 0x22c   :  { %2467 = vmatprep.subr.mxu1 %v2525_v0  ;;  %2425 = vmatpush3.msra.mxu0 %v1265_v34 }
 0x22d   :  { %2468 = vmatpush3.msra.mxu1 %v2960_v2  ;;  %2426 = vmatprep.subr.mxu0 %v2525_v0 }
 0x22e   :  { %2469 = vmatprep.subr.mxu1 %v2525_v0  ;;  %2427 = vmatpush3.msra.mxu0 %v1272_v38  ;;  %v1800_v38 = vsub.s32 3, %v2765_v33 }
 0x22f   :  { %2470 = vmatpush3.msra.mxu1 %v2972_v13  ;;  %2428 = vmatprep.subr.mxu0 %v2525_v0 }
 0x230   :  { %2471 = vmatprep.subr.mxu1 %v2525_v0  ;;  %2429 = vmatpush3.msra.mxu0 %v1279_v42  ;;  %v1801_v57 = vrot.slane %v2768_v46, %v1800_v38 }
 0x231   :  { %2472 = vmatpush3.msra.mxu1 %v3027_v29  ;;  %2430 = vmatprep.subr.mxu0 %v2525_v0 }
 0x232   :  { %2473 = vmatprep.subr.mxu1 %v2525_v0  ;;  %2431 = vmatpush3.msra.mxu0 %v1286_v53 }
 0x233   :  { %2474 = vmatpush3.msra.mxu1 %v3035_v12  ;;  %2432 = vmatprep.subr.mxu0 %v2525_v0 }
 0x234   :  { %2475 = vmatprep.subr.mxu1 %v2525_v0  ;;  %2433 = vmatpush3.msra.mxu0 %v1293_v54 }
 0x235   :  { %2476 = vmatpush3.msra.mxu1 %v3044_v16  ;;  %2434 = vmatprep.subr.mxu0 %v2525_v0 }
 0x236   :  { %2477 = vmatprep.subr.mxu1 %v2525_v0  ;;  %2435 = vmatpush3.msra.mxu0 %v1300_v4 }
 0x237   :  { %2478 = vmatpush3.msra.mxu1 %v3056_v27  ;;  %2436 = vmatprep.subr.mxu0 %v2525_v0 }
 0x238   :  { %2479 = vmatprep.subr.mxu1 %v2525_v0  ;;  %2437 = vmatpush3.msra.mxu0 %v1307_v11 }
 0x239   :  { %2480 = vmatpush3.msra.mxu1 %v3070_v48  ;;  %2438 = vmatprep.subr.mxu0 %v2525_v0 }
 0x23a   :  { %2481 = vmatprep.subr.mxu1 %v2525_v0  ;;  %2439 = vmatpush3.msra.mxu0 %v1314_v25  ;;  %v1814_v25 = vsub.s32 4, %v2765_v33 }
 0x23b   :  { %2482 = vmatpush3.msra.mxu1 %v3077_v58  ;;  %2440 = vmatprep.subr.mxu0 %v2525_v0 }
 0x23c   :  { %2483 = vmatprep.subr.mxu1 %v2525_v0  ;;  %2441 = vmatpush3.msra.mxu0 %v3323_v30  ;;  %v1815_v27 = vrot.slane %v2499_v26, %v1814_v25 }
 0x23d   :  { %2484 = vmatpush3.msra.mxu1 %v3090_v61  ;;  %2442 = vmatprep.subr.mxu0 %v2525_v0 }
 0x23e   :  { %2485 = vmatprep.subr.mxu1 %v2525_v0  ;;  %2443 = vmatpush3.msra.mxu0 %v3324_v32 }
 0x23f   :  { %2486 = vmatpush3.msra.mxu1 %v3100_v43  ;;  %2487 = vmatprep.mubr.msk.f32.mxu1 %vm2526_vm0, %v2525_v0 }
 0x240   :  { %2444 = vmatprep.subr.mxu0 %v2525_v0  ;;  %2488 = vmatmul.mubr.f32.vlgmr.msra.gmra.mxu1 %v3130_v39 }
 0x241   :  { %2445 = vmatpush3.msra.mxu0 %v3325_v35  ;;  %2452 = vmatprep.mubr.msk.f32.mxu0 %vm2526_vm0, %v2525_v0 }
 0x242   :  { %2446 = vmatprep.subr.mxu0 %v2525_v0 }
 0x243   :  { %2447 = vmatpush3.msra.mxu0 %v3326_v40 }
 0x244   :  { %2448 = vmatprep.subr.mxu0 %v2525_v0 }
 0x245   :  { %2449 = vmatpush3.msra.mxu0 %v3327_v41 }
 0x246   :  { %2450 = vmatprep.subr.mxu0 %v2525_v0 }
 0x247   :  { %2451 = vmatpush3.msra.mxu0 %v3328_v44 }
 0x248   :  { %2453 = vmatmul.mubr.f32.vlgmr.msra.gmra.mxu0 %v3130_v39 }
 0x2be   :  { %v1395_v52 = vpop.f32.mrf.mxu1 }
 0x2c0   :  { %v2349_v55 = vpop.f32.mrf.mxu1 }
 0x2c6   :  { %v1244_v63 = vpop.f32.mrf.mxu0 }
 0x2c7   :  { %v1396_v23 = vadd.f32 %v1395_v52, %v1244_v63 }
 0x2c8   :  { %v2314_v2 = vpop.f32.mrf.mxu0 }
 0x2de   :  { %v1588_v3 = vpop.f32.mrf.mxu1 }
 0x2e0   :  { %v2419_v7 = vpop.f32.mrf.mxu1 }
 0x2e7   :  { %v1499_v8 = vpop.f32.mrf.mxu0 }
 0x2e8   :  { %v1500_v34 = vadd.f32 %v1499_v8, %v1396_v23 }
 0x2e9   :  { %v2384_v13 = vpop.f32.mrf.mxu0 }
 0x2ea   :  { %v1589_v0 = vadd.f32 %v1588_v3, %v1500_v34 }
 0x300   :  { %v1794_v22 = vpop.f32.mrf.mxu1 }
 0x302   :  { %v2489_v24 = vpop.f32.mrf.mxu1 }
 0x308   :  { %v1707_v42 = vpop.f32.mrf.mxu0 }
 0x309   :  { %v1708_v53 = vadd.f32 %v1707_v42, %v1589_v0 }
 0x30a   :  { %v2454_v54 = vpop.f32.mrf.mxu0 }
 0x30b   :  { %v1795_v4 = vadd.f32 %v1794_v22, %v1708_v53 }
 0x30d   :  { %v1802_v29 = vadd.f32 %v1801_v57, %v1795_v4  ;;  %v1816_v45 = vmul.f32 %v1815_v27, %v1795_v4 }
 0x30f   :  { %1803 = vmax.xlane.f32.xlu0 %v1802_v29 }
 0x398   :  { %v1804_v17 = vpop.xlane.xlu0 %1803 }
 0x399   :  { %v1805_v12 = vsub.f32 %v1802_v29, %v1804_v17 }
 0x39b   :  { %v1806_v11 = vmul.f32 1.442695, %v1805_v12 }
 0x39d   :  { %2495 = vpow2.f32 %v1806_v11 }
 0x3aa   :  { %v2496_v15 = vpop.eup %2495 }
 0x3ab   :  { %1808 = vadd.xlane.f32.xlu0 %v2496_v15 }
 0x434   :  { %v1809_v16 = vpop.xlane.xlu0 %1808 }
 0x435   :  { %2497 = vrcp.f32 %v1809_v16 }
 0x442   :  { %v2498_v39 = vpop.eup %2497 }
 0x443   :  { %v1811_v48 = vmul.f32 %v2498_v39, %v2496_v15 }
 0x445   :  { %v1817_v46 = vadd.f32 %v1816_v45, %v1811_v48 }
 0x447   :  { %1818 = vst.msk [vmem:[%s3300_s2] sm:$0xff] %vm64_vm1, %v1817_v46 }
 0x448   :  { %1823 = vsyncpa [#allocation3], 1 }

</bundles_post_ra>
